<compile_context>
chip_gen: v5e
topology: v5e:2x2
jax: 0.10.0
libtpu: 0.0.40
codegen_flags: <defaults>
</compile_context>

<pallas_src>
import functools

import jax
import jax.numpy as jnp
from jax.experimental import pallas as pl
from jax.experimental.pallas import tpu as pltpu


def _mhsa_kernel(xq_ref, xkv_ref, w_ref, b_ref, o_ref, *, head):
    # xq_ref : (1, Tq, D)  query-row tile of x
    # xkv_ref: (1, S,  D)  full sequence of x (for K/V projections)
    # w_ref  : (D, 3D)     fused, pre-transposed [Wq.T | Wk.T | Wv.T], bf16
    # b_ref  : (1, 3D)     fused bias [bq | bk | bv], f32
    # o_ref  : (1, Tq, D)
    Tq = xq_ref.shape[1]
    S = xkv_ref.shape[1]
    D = xq_ref.shape[2]
    dh = D // head

    xkv = xkv_ref[0].astype(jnp.bfloat16)            # (S, D)
    w = w_ref[...]                                   # (D, 3D) bf16
    b = b_ref[...]                                   # (1, 3D) f32

    if Tq == S:
        # Single query tile: one fully fused (S, D) x (D, 3D) MXU matmul.
        qkv = jnp.dot(xkv, w, preferred_element_type=jnp.float32) + b
        q = qkv[:, :D]
        k = qkv[:, D:2 * D]
        v = qkv[:, 2 * D:]
    else:
        # Tiled queries: Q from the query tile, fused K|V from the full sequence.
        xq = xq_ref[0].astype(jnp.bfloat16)          # (Tq, D)
        q = jnp.dot(xq, w[:, :D], preferred_element_type=jnp.float32) + b[:, :D]
        kv = jnp.dot(xkv, w[:, D:], preferred_element_type=jnp.float32) + b[:, D:]
        k = kv[:, :D]
        v = kv[:, D:]

    # bf16 operands for the attention matmuls; accumulation stays f32.
    qb = q.astype(jnp.bfloat16)
    kb = k.astype(jnp.bfloat16)
    vb = v.astype(jnp.bfloat16)

    # Contract the last dim of both operands (no explicit kh.T relayout).
    dn = (((1,), (1,)), ((), ()))

    # TODO(synk): a head-batched (head, Tq, dh) einsum layout would avoid the
    #             per-head lane-dim slices; kept statically-unrolled here for
    #             robust lowering at small dh.
    outs = []
    for h in range(head):
        qh = qb[:, h * dh:(h + 1) * dh]              # (Tq, dh)
        kh = kb[:, h * dh:(h + 1) * dh]              # (S,  dh)
        vh = vb[:, h * dh:(h + 1) * dh]              # (S,  dh)

        s = jax.lax.dot_general(qh, kh, dn,
                                preferred_element_type=jnp.float32)   # (Tq, S)
        # softmax along last axis (no scaling, matching the reference)
        s = s - jnp.max(s, axis=-1, keepdims=True)
        p = jnp.exp(s)
        inv = pl.reciprocal(jnp.sum(p, axis=-1, keepdims=True), approx=True)
        wgt = (p * inv).astype(jnp.bfloat16)

        outs.append(jnp.dot(wgt, vh, preferred_element_type=jnp.float32))

    # One lane-dense, full-width store (no masked per-head column stores).
    y = jnp.concatenate(outs, axis=-1)               # (Tq, D)
    o_ref[0, :, :] = y.astype(o_ref.dtype)


def multi_head_self_attention(x, wq, bq, wk, bk, wv, bv, *, head, block_q=None):
    """x: (B, S, D) float32.  Weights (D, D) PyTorch layout, biases (1, D)."""
    B, S, D = x.shape
    assert D % head == 0, "dim must be divisible by head"

    # Fuse + pre-transpose the projections ONCE in XLA (outside the kernel):
    #   columns of w_qkv are [Wq.T | Wk.T | Wv.T]  ->  kernel computes x @ W.
    w_qkv = jnp.concatenate([wq.T, wk.T, wv.T], axis=1).astype(jnp.bfloat16)  # (D, 3D)
    b_qkv = jnp.concatenate([bq, bk, bv], axis=1).astype(jnp.float32)         # (1, 3D)

    # Query-tile size: keep whole sequence for short S; cap tile for long S.
    if block_q is None:
        block_q = S if S <= 512 else 512
    if S % block_q != 0:
        block_q = S
    n_q = S // block_q

    kernel = functools.partial(_mhsa_kernel, head=head)

    itemsize = x.dtype.itemsize
    cost = pl.CostEstimate(
        flops=int(B * (6 * S * D * D + 4 * S * S * D)),
        transcendentals=int(B * head * S * S),
        bytes_accessed=int(x.size * itemsize * (1 + n_q)   # x fetched for Q tiles + full-seq KV
                           + w_qkv.size * 2 + b_qkv.size * 4
                           + B * S * D * itemsize),
    )

    return pl.pallas_call(
        kernel,
        out_shape=jax.ShapeDtypeStruct((B, S, D), x.dtype),
        grid_spec=pltpu.PrefetchScalarGridSpec(
            num_scalar_prefetch=0,
            grid=(B, n_q),
            in_specs=[
                pl.BlockSpec((1, block_q, D), lambda b, qi: (b, qi, 0)),   # x (query rows)
                pl.BlockSpec((1, S, D), lambda b, qi: (b, 0, 0)),          # x (full seq, K/V)
                pl.BlockSpec((D, 3 * D), lambda b, qi: (0, 0)),            # fused W
                pl.BlockSpec((1, 3 * D), lambda b, qi: (0, 0)),            # fused bias
            ],
            out_specs=pl.BlockSpec((1, block_q, D), lambda b, qi: (b, qi, 0)),
        ),
        compiler_params=pltpu.CompilerParams(
            # Both axes independent (each (b, q-tile) writes its own output block);
            # >= 2 parallel steps keeps both v7x TensorCores busy when B >= 2.
            dimension_semantics=("parallel", "parallel"),
            # NOTE: for large S/D raise vmem_limit_bytes here (e.g. 64-96 MiB on
            # v5e/v6e); left at default since the demo footprint is tiny.
        ),
        cost_estimate=cost,
    )(x, x, w_qkv, b_qkv)


def _reference(x, wq, bq, wk, bk, wv, bv, head):
    """Pure-JAX mirror of the PyTorch forward (for a correctness check)."""
    q = x @ wq.T + bq[0]
    k = x @ wk.T + bk[0]
    v = x @ wv.T + bv[0]

    # chunk along dim=2, cat along dim=0  -> (head*B, S, dh), head-major
    def split(t):
        return jnp.concatenate(jnp.split(t, head, axis=2), axis=0)

    qh, kh, vh = split(q), split(k), split(v)
    w = jax.nn.softmax(jnp.matmul(qh, jnp.transpose(kh, (0, 2, 1))), axis=2)
    y = jnp.matmul(w, vh)
    # chunk along dim=0, cat along dim=2
    return jnp.concatenate(jnp.split(y, head, axis=0), axis=2)


if __name__ == "__main__":
    B, S, D, HEAD = 2, 8, 32, 8

    key = jax.random.PRNGKey(0)
    kx, kq, kbq, kk, kbk, kv, kbv = jax.random.split(key, 7)

    x = jax.random.normal(kx, (B, S, D), dtype=jnp.float32)
    # Deterministic parameter init (uniform, roughly matching nn.Linear scale).
    bound = 1.0 / (D ** 0.5)
    wq = jax.random.uniform(kq, (D, D), jnp.float32, -bound, bound)
    bq = jax.random.uniform(kbq, (1, D), jnp.float32, -bound, bound)
    wk = jax.random.uniform(kk, (D, D), jnp.float32, -bound, bound)
    bk = jax.random.uniform(kbk, (1, D), jnp.float32, -bound, bound)
    wv = jax.random.uniform(kv, (D, D), jnp.float32, -bound, bound)
    bv = jax.random.uniform(kbv, (1, D), jnp.float32, -bound, bound)

    y = multi_head_self_attention(x, wq, bq, wk, bk, wv, bv, head=HEAD)
    y = jax.block_until_ready(y)

    y_ref = _reference(x, wq, bq, wk, bk, wv, bv, HEAD)
    assert y.shape == (B, S, D)
    # Tolerance loosened vs. v1: bf16 MXU operands + approx reciprocal.
    assert jnp.allclose(y, y_ref, atol=2e-2, rtol=2e-2), float(
        jnp.max(jnp.abs(y - y_ref)))

    print("KERNEL_OK")
</pallas_src>

<mosaic_0001>
module attributes {stable_mosaic.version = 11 : i64} {
  func.func @_mhsa_kernel(%arg0: i32, %arg1: i32, %arg2: memref<1x8x32xf32, #tpu.memory_space<vmem>>, %arg3: memref<1x8x32xf32, #tpu.memory_space<vmem>>, %arg4: memref<32x96xbf16, #tpu.memory_space<vmem>>, %arg5: memref<1x96xf32, #tpu.memory_space<vmem>>, %arg6: memref<1x8x32xf32, #tpu.memory_space<vmem>>) attributes {dimension_semantics = [#tpu.dimension_semantics<parallel>, #tpu.dimension_semantics<parallel>], iteration_bounds = array<i64: 2, 1>, scalar_prefetch = 0 : i64, scratch_operands = 0 : i64, tpu.core_type = #tpu.core_type<tc>, window_params = [{transform_indices = @transform_0, window_bounds = array<i64: 1, 8, 32>}, {transform_indices = @transform_1, window_bounds = array<i64: 1, 8, 32>}, {pipeline_mode = #tpu.pipeline_mode<synchronous>, transform_indices = @transform_2, window_bounds = array<i64: 32, 96>}, {pipeline_mode = #tpu.pipeline_mode<synchronous>, transform_indices = @transform_3, window_bounds = array<i64: 1, 96>}, {transform_indices = @transform_4, window_bounds = array<i64: 1, 8, 32>}]} {
    %c0 = arith.constant 0 : index
    %c0_0 = arith.constant 0 : index
    %c0_1 = arith.constant 0 : index
    %0 = vector.load %arg3[%c0, %c0_0, %c0_1] : memref<1x8x32xf32, #tpu.memory_space<vmem>>, vector<1x8x32xf32>
    %1 = vector.shape_cast %0 : vector<1x8x32xf32> to vector<8x32xf32>
    %2 = arith.truncf %1 : vector<8x32xf32> to vector<8x32xbf16>
    %c0_2 = arith.constant 0 : index
    %c0_3 = arith.constant 0 : index
    %3 = vector.load %arg4[%c0_2, %c0_3] : memref<32x96xbf16, #tpu.memory_space<vmem>>, vector<32x96xbf16>
    %c0_4 = arith.constant 0 : index
    %c0_5 = arith.constant 0 : index
    %4 = vector.load %arg5[%c0_4, %c0_5] : memref<1x96xf32, #tpu.memory_space<vmem>>, vector<1x96xf32>
    %cst = arith.constant dense<0.000000e+00> : vector<8x96xf32>
    %5 = tpu.matmul %2, %3, %cst {dimension_numbers = #tpu.dot_dimension_numbers<[1], [0], [0], [1], [0, 0, 1, 1], [], []>} : vector<8x32xbf16>, vector<32x96xbf16>, vector<8x96xf32> -> vector<8x96xf32>
    %6 = vector.broadcast %4 : vector<1x96xf32> to vector<8x96xf32>
    %7 = arith.addf %5, %6 : vector<8x96xf32>
    %8 = vector.extract_strided_slice %7 {offsets = [0, 0], sizes = [8, 32], strides = [1, 1]} : vector<8x96xf32> to vector<8x32xf32>
    %9 = vector.extract_strided_slice %7 {offsets = [0, 32], sizes = [8, 32], strides = [1, 1]} : vector<8x96xf32> to vector<8x32xf32>
    %10 = vector.extract_strided_slice %7 {offsets = [0, 64], sizes = [8, 32], strides = [1, 1]} : vector<8x96xf32> to vector<8x32xf32>
    %11 = arith.truncf %8 : vector<8x32xf32> to vector<8x32xbf16>
    %12 = arith.truncf %9 : vector<8x32xf32> to vector<8x32xbf16>
    %13 = arith.truncf %10 : vector<8x32xf32> to vector<8x32xbf16>
    %14 = vector.extract_strided_slice %11 {offsets = [0, 0], sizes = [8, 4], strides = [1, 1]} : vector<8x32xbf16> to vector<8x4xbf16>
    %15 = vector.extract_strided_slice %12 {offsets = [0, 0], sizes = [8, 4], strides = [1, 1]} : vector<8x32xbf16> to vector<8x4xbf16>
    %16 = vector.extract_strided_slice %13 {offsets = [0, 0], sizes = [8, 4], strides = [1, 1]} : vector<8x32xbf16> to vector<8x4xbf16>
    %cst_6 = arith.constant dense<0.000000e+00> : vector<8x8xf32>
    %17 = tpu.matmul %14, %15, %cst_6 {dimension_numbers = #tpu.dot_dimension_numbers<[1], [1], [0], [0], [0, 0, 1, 0], [], []>} : vector<8x4xbf16>, vector<8x4xbf16>, vector<8x8xf32> -> vector<8x8xf32>
    %cst_7 = arith.constant dense<0xFF800000> : vector<8xf32>
    %18 = vector.multi_reduction <maximumf>, %17, %cst_7 [1] : vector<8x8xf32> to vector<8xf32>
    %19 = vector.shape_cast %18 : vector<8xf32> to vector<8x1xf32>
    %20 = vector.broadcast %19 : vector<8x1xf32> to vector<8x8xf32>
    %21 = arith.subf %17, %20 : vector<8x8xf32>
    %22 = math.exp %21 : vector<8x8xf32>
    %cst_8 = arith.constant dense<0.000000e+00> : vector<8xf32>
    %23 = vector.multi_reduction <add>, %22, %cst_8 [1] : vector<8x8xf32> to vector<8xf32>
    %24 = vector.shape_cast %23 : vector<8xf32> to vector<8x1xf32>
    %25 = tpu.reciprocal %24 {approx = true} : vector<8x1xf32> -> vector<8x1xf32>
    %26 = vector.broadcast %25 : vector<8x1xf32> to vector<8x8xf32>
    %27 = arith.mulf %22, %26 : vector<8x8xf32>
    %28 = arith.truncf %27 : vector<8x8xf32> to vector<8x8xbf16>
    %cst_9 = arith.constant dense<0.000000e+00> : vector<8x4xf32>
    %29 = tpu.matmul %28, %16, %cst_9 {dimension_numbers = #tpu.dot_dimension_numbers<[1], [0], [0], [1], [0, 0, 1, 1], [], []>} : vector<8x8xbf16>, vector<8x4xbf16>, vector<8x4xf32> -> vector<8x4xf32>
    %30 = vector.extract_strided_slice %11 {offsets = [0, 4], sizes = [8, 4], strides = [1, 1]} : vector<8x32xbf16> to vector<8x4xbf16>
    %31 = vector.extract_strided_slice %12 {offsets = [0, 4], sizes = [8, 4], strides = [1, 1]} : vector<8x32xbf16> to vector<8x4xbf16>
    %32 = vector.extract_strided_slice %13 {offsets = [0, 4], sizes = [8, 4], strides = [1, 1]} : vector<8x32xbf16> to vector<8x4xbf16>
    %cst_10 = arith.constant dense<0.000000e+00> : vector<8x8xf32>
    %33 = tpu.matmul %30, %31, %cst_10 {dimension_numbers = #tpu.dot_dimension_numbers<[1], [1], [0], [0], [0, 0, 1, 0], [], []>} : vector<8x4xbf16>, vector<8x4xbf16>, vector<8x8xf32> -> vector<8x8xf32>
    %cst_11 = arith.constant dense<0xFF800000> : vector<8xf32>
    %34 = vector.multi_reduction <maximumf>, %33, %cst_11 [1] : vector<8x8xf32> to vector<8xf32>
    %35 = vector.shape_cast %34 : vector<8xf32> to vector<8x1xf32>
    %36 = vector.broadcast %35 : vector<8x1xf32> to vector<8x8xf32>
    %37 = arith.subf %33, %36 : vector<8x8xf32>
    %38 = math.exp %37 : vector<8x8xf32>
    %cst_12 = arith.constant dense<0.000000e+00> : vector<8xf32>
    %39 = vector.multi_reduction <add>, %38, %cst_12 [1] : vector<8x8xf32> to vector<8xf32>
    %40 = vector.shape_cast %39 : vector<8xf32> to vector<8x1xf32>
    %41 = tpu.reciprocal %40 {approx = true} : vector<8x1xf32> -> vector<8x1xf32>
    %42 = vector.broadcast %41 : vector<8x1xf32> to vector<8x8xf32>
    %43 = arith.mulf %38, %42 : vector<8x8xf32>
    %44 = arith.truncf %43 : vector<8x8xf32> to vector<8x8xbf16>
    %cst_13 = arith.constant dense<0.000000e+00> : vector<8x4xf32>
    %45 = tpu.matmul %44, %32, %cst_13 {dimension_numbers = #tpu.dot_dimension_numbers<[1], [0], [0], [1], [0, 0, 1, 1], [], []>} : vector<8x8xbf16>, vector<8x4xbf16>, vector<8x4xf32> -> vector<8x4xf32>
    %46 = vector.extract_strided_slice %11 {offsets = [0, 8], sizes = [8, 4], strides = [1, 1]} : vector<8x32xbf16> to vector<8x4xbf16>
    %47 = vector.extract_strided_slice %12 {offsets = [0, 8], sizes = [8, 4], strides = [1, 1]} : vector<8x32xbf16> to vector<8x4xbf16>
    %48 = vector.extract_strided_slice %13 {offsets = [0, 8], sizes = [8, 4], strides = [1, 1]} : vector<8x32xbf16> to vector<8x4xbf16>
    %cst_14 = arith.constant dense<0.000000e+00> : vector<8x8xf32>
    %49 = tpu.matmul %46, %47, %cst_14 {dimension_numbers = #tpu.dot_dimension_numbers<[1], [1], [0], [0], [0, 0, 1, 0], [], []>} : vector<8x4xbf16>, vector<8x4xbf16>, vector<8x8xf32> -> vector<8x8xf32>
    %cst_15 = arith.constant dense<0xFF800000> : vector<8xf32>
    %50 = vector.multi_reduction <maximumf>, %49, %cst_15 [1] : vector<8x8xf32> to vector<8xf32>
    %51 = vector.shape_cast %50 : vector<8xf32> to vector<8x1xf32>
    %52 = vector.broadcast %51 : vector<8x1xf32> to vector<8x8xf32>
    %53 = arith.subf %49, %52 : vector<8x8xf32>
    %54 = math.exp %53 : vector<8x8xf32>
    %cst_16 = arith.constant dense<0.000000e+00> : vector<8xf32>
    %55 = vector.multi_reduction <add>, %54, %cst_16 [1] : vector<8x8xf32> to vector<8xf32>
    %56 = vector.shape_cast %55 : vector<8xf32> to vector<8x1xf32>
    %57 = tpu.reciprocal %56 {approx = true} : vector<8x1xf32> -> vector<8x1xf32>
    %58 = vector.broadcast %57 : vector<8x1xf32> to vector<8x8xf32>
    %59 = arith.mulf %54, %58 : vector<8x8xf32>
    %60 = arith.truncf %59 : vector<8x8xf32> to vector<8x8xbf16>
    %cst_17 = arith.constant dense<0.000000e+00> : vector<8x4xf32>
    %61 = tpu.matmul %60, %48, %cst_17 {dimension_numbers = #tpu.dot_dimension_numbers<[1], [0], [0], [1], [0, 0, 1, 1], [], []>} : vector<8x8xbf16>, vector<8x4xbf16>, vector<8x4xf32> -> vector<8x4xf32>
    %62 = vector.extract_strided_slice %11 {offsets = [0, 12], sizes = [8, 4], strides = [1, 1]} : vector<8x32xbf16> to vector<8x4xbf16>
    %63 = vector.extract_strided_slice %12 {offsets = [0, 12], sizes = [8, 4], strides = [1, 1]} : vector<8x32xbf16> to vector<8x4xbf16>
    %64 = vector.extract_strided_slice %13 {offsets = [0, 12], sizes = [8, 4], strides = [1, 1]} : vector<8x32xbf16> to vector<8x4xbf16>
    %cst_18 = arith.constant dense<0.000000e+00> : vector<8x8xf32>
    %65 = tpu.matmul %62, %63, %cst_18 {dimension_numbers = #tpu.dot_dimension_numbers<[1], [1], [0], [0], [0, 0, 1, 0], [], []>} : vector<8x4xbf16>, vector<8x4xbf16>, vector<8x8xf32> -> vector<8x8xf32>
    %cst_19 = arith.constant dense<0xFF800000> : vector<8xf32>
    %66 = vector.multi_reduction <maximumf>, %65, %cst_19 [1] : vector<8x8xf32> to vector<8xf32>
    %67 = vector.shape_cast %66 : vector<8xf32> to vector<8x1xf32>
    %68 = vector.broadcast %67 : vector<8x1xf32> to vector<8x8xf32>
    %69 = arith.subf %65, %68 : vector<8x8xf32>
    %70 = math.exp %69 : vector<8x8xf32>
    %cst_20 = arith.constant dense<0.000000e+00> : vector<8xf32>
    %71 = vector.multi_reduction <add>, %70, %cst_20 [1] : vector<8x8xf32> to vector<8xf32>
    %72 = vector.shape_cast %71 : vector<8xf32> to vector<8x1xf32>
    %73 = tpu.reciprocal %72 {approx = true} : vector<8x1xf32> -> vector<8x1xf32>
    %74 = vector.broadcast %73 : vector<8x1xf32> to vector<8x8xf32>
    %75 = arith.mulf %70, %74 : vector<8x8xf32>
    %76 = arith.truncf %75 : vector<8x8xf32> to vector<8x8xbf16>
    %cst_21 = arith.constant dense<0.000000e+00> : vector<8x4xf32>
    %77 = tpu.matmul %76, %64, %cst_21 {dimension_numbers = #tpu.dot_dimension_numbers<[1], [0], [0], [1], [0, 0, 1, 1], [], []>} : vector<8x8xbf16>, vector<8x4xbf16>, vector<8x4xf32> -> vector<8x4xf32>
    %78 = vector.extract_strided_slice %11 {offsets = [0, 16], sizes = [8, 4], strides = [1, 1]} : vector<8x32xbf16> to vector<8x4xbf16>
    %79 = vector.extract_strided_slice %12 {offsets = [0, 16], sizes = [8, 4], strides = [1, 1]} : vector<8x32xbf16> to vector<8x4xbf16>
    %80 = vector.extract_strided_slice %13 {offsets = [0, 16], sizes = [8, 4], strides = [1, 1]} : vector<8x32xbf16> to vector<8x4xbf16>
    %cst_22 = arith.constant dense<0.000000e+00> : vector<8x8xf32>
    %81 = tpu.matmul %78, %79, %cst_22 {dimension_numbers = #tpu.dot_dimension_numbers<[1], [1], [0], [0], [0, 0, 1, 0], [], []>} : vector<8x4xbf16>, vector<8x4xbf16>, vector<8x8xf32> -> vector<8x8xf32>
    %cst_23 = arith.constant dense<0xFF800000> : vector<8xf32>
    %82 = vector.multi_reduction <maximumf>, %81, %cst_23 [1] : vector<8x8xf32> to vector<8xf32>
    %83 = vector.shape_cast %82 : vector<8xf32> to vector<8x1xf32>
    %84 = vector.broadcast %83 : vector<8x1xf32> to vector<8x8xf32>
    %85 = arith.subf %81, %84 : vector<8x8xf32>
    %86 = math.exp %85 : vector<8x8xf32>
    %cst_24 = arith.constant dense<0.000000e+00> : vector<8xf32>
    %87 = vector.multi_reduction <add>, %86, %cst_24 [1] : vector<8x8xf32> to vector<8xf32>
    %88 = vector.shape_cast %87 : vector<8xf32> to vector<8x1xf32>
    %89 = tpu.reciprocal %88 {approx = true} : vector<8x1xf32> -> vector<8x1xf32>
    %90 = vector.broadcast %89 : vector<8x1xf32> to vector<8x8xf32>
    %91 = arith.mulf %86, %90 : vector<8x8xf32>
    %92 = arith.truncf %91 : vector<8x8xf32> to vector<8x8xbf16>
    %cst_25 = arith.constant dense<0.000000e+00> : vector<8x4xf32>
    %93 = tpu.matmul %92, %80, %cst_25 {dimension_numbers = #tpu.dot_dimension_numbers<[1], [0], [0], [1], [0, 0, 1, 1], [], []>} : vector<8x8xbf16>, vector<8x4xbf16>, vector<8x4xf32> -> vector<8x4xf32>
    %94 = vector.extract_strided_slice %11 {offsets = [0, 20], sizes = [8, 4], strides = [1, 1]} : vector<8x32xbf16> to vector<8x4xbf16>
    %95 = vector.extract_strided_slice %12 {offsets = [0, 20], sizes = [8, 4], strides = [1, 1]} : vector<8x32xbf16> to vector<8x4xbf16>
    %96 = vector.extract_strided_slice %13 {offsets = [0, 20], sizes = [8, 4], strides = [1, 1]} : vector<8x32xbf16> to vector<8x4xbf16>
    %cst_26 = arith.constant dense<0.000000e+00> : vector<8x8xf32>
    %97 = tpu.matmul %94, %95, %cst_26 {dimension_numbers = #tpu.dot_dimension_numbers<[1], [1], [0], [0], [0, 0, 1, 0], [], []>} : vector<8x4xbf16>, vector<8x4xbf16>, vector<8x8xf32> -> vector<8x8xf32>
    %cst_27 = arith.constant dense<0xFF800000> : vector<8xf32>
    %98 = vector.multi_reduction <maximumf>, %97, %cst_27 [1] : vector<8x8xf32> to vector<8xf32>
    %99 = vector.shape_cast %98 : vector<8xf32> to vector<8x1xf32>
    %100 = vector.broadcast %99 : vector<8x1xf32> to vector<8x8xf32>
    %101 = arith.subf %97, %100 : vector<8x8xf32>
    %102 = math.exp %101 : vector<8x8xf32>
    %cst_28 = arith.constant dense<0.000000e+00> : vector<8xf32>
    %103 = vector.multi_reduction <add>, %102, %cst_28 [1] : vector<8x8xf32> to vector<8xf32>
    %104 = vector.shape_cast %103 : vector<8xf32> to vector<8x1xf32>
    %105 = tpu.reciprocal %104 {approx = true} : vector<8x1xf32> -> vector<8x1xf32>
    %106 = vector.broadcast %105 : vector<8x1xf32> to vector<8x8xf32>
    %107 = arith.mulf %102, %106 : vector<8x8xf32>
    %108 = arith.truncf %107 : vector<8x8xf32> to vector<8x8xbf16>
    %cst_29 = arith.constant dense<0.000000e+00> : vector<8x4xf32>
    %109 = tpu.matmul %108, %96, %cst_29 {dimension_numbers = #tpu.dot_dimension_numbers<[1], [0], [0], [1], [0, 0, 1, 1], [], []>} : vector<8x8xbf16>, vector<8x4xbf16>, vector<8x4xf32> -> vector<8x4xf32>
    %110 = vector.extract_strided_slice %11 {offsets = [0, 24], sizes = [8, 4], strides = [1, 1]} : vector<8x32xbf16> to vector<8x4xbf16>
    %111 = vector.extract_strided_slice %12 {offsets = [0, 24], sizes = [8, 4], strides = [1, 1]} : vector<8x32xbf16> to vector<8x4xbf16>
    %112 = vector.extract_strided_slice %13 {offsets = [0, 24], sizes = [8, 4], strides = [1, 1]} : vector<8x32xbf16> to vector<8x4xbf16>
    %cst_30 = arith.constant dense<0.000000e+00> : vector<8x8xf32>
    %113 = tpu.matmul %110, %111, %cst_30 {dimension_numbers = #tpu.dot_dimension_numbers<[1], [1], [0], [0], [0, 0, 1, 0], [], []>} : vector<8x4xbf16>, vector<8x4xbf16>, vector<8x8xf32> -> vector<8x8xf32>
    %cst_31 = arith.constant dense<0xFF800000> : vector<8xf32>
    %114 = vector.multi_reduction <maximumf>, %113, %cst_31 [1] : vector<8x8xf32> to vector<8xf32>
    %115 = vector.shape_cast %114 : vector<8xf32> to vector<8x1xf32>
    %116 = vector.broadcast %115 : vector<8x1xf32> to vector<8x8xf32>
    %117 = arith.subf %113, %116 : vector<8x8xf32>
    %118 = math.exp %117 : vector<8x8xf32>
    %cst_32 = arith.constant dense<0.000000e+00> : vector<8xf32>
    %119 = vector.multi_reduction <add>, %118, %cst_32 [1] : vector<8x8xf32> to vector<8xf32>
    %120 = vector.shape_cast %119 : vector<8xf32> to vector<8x1xf32>
    %121 = tpu.reciprocal %120 {approx = true} : vector<8x1xf32> -> vector<8x1xf32>
    %122 = vector.broadcast %121 : vector<8x1xf32> to vector<8x8xf32>
    %123 = arith.mulf %118, %122 : vector<8x8xf32>
    %124 = arith.truncf %123 : vector<8x8xf32> to vector<8x8xbf16>
    %cst_33 = arith.constant dense<0.000000e+00> : vector<8x4xf32>
    %125 = tpu.matmul %124, %112, %cst_33 {dimension_numbers = #tpu.dot_dimension_numbers<[1], [0], [0], [1], [0, 0, 1, 1], [], []>} : vector<8x8xbf16>, vector<8x4xbf16>, vector<8x4xf32> -> vector<8x4xf32>
    %126 = vector.extract_strided_slice %11 {offsets = [0, 28], sizes = [8, 4], strides = [1, 1]} : vector<8x32xbf16> to vector<8x4xbf16>
    %127 = vector.extract_strided_slice %12 {offsets = [0, 28], sizes = [8, 4], strides = [1, 1]} : vector<8x32xbf16> to vector<8x4xbf16>
    %128 = vector.extract_strided_slice %13 {offsets = [0, 28], sizes = [8, 4], strides = [1, 1]} : vector<8x32xbf16> to vector<8x4xbf16>
    %cst_34 = arith.constant dense<0.000000e+00> : vector<8x8xf32>
    %129 = tpu.matmul %126, %127, %cst_34 {dimension_numbers = #tpu.dot_dimension_numbers<[1], [1], [0], [0], [0, 0, 1, 0], [], []>} : vector<8x4xbf16>, vector<8x4xbf16>, vector<8x8xf32> -> vector<8x8xf32>
    %cst_35 = arith.constant dense<0xFF800000> : vector<8xf32>
    %130 = vector.multi_reduction <maximumf>, %129, %cst_35 [1] : vector<8x8xf32> to vector<8xf32>
    %131 = vector.shape_cast %130 : vector<8xf32> to vector<8x1xf32>
    %132 = vector.broadcast %131 : vector<8x1xf32> to vector<8x8xf32>
    %133 = arith.subf %129, %132 : vector<8x8xf32>
    %134 = math.exp %133 : vector<8x8xf32>
    %cst_36 = arith.constant dense<0.000000e+00> : vector<8xf32>
    %135 = vector.multi_reduction <add>, %134, %cst_36 [1] : vector<8x8xf32> to vector<8xf32>
    %136 = vector.shape_cast %135 : vector<8xf32> to vector<8x1xf32>
    %137 = tpu.reciprocal %136 {approx = true} : vector<8x1xf32> -> vector<8x1xf32>
    %138 = vector.broadcast %137 : vector<8x1xf32> to vector<8x8xf32>
    %139 = arith.mulf %134, %138 : vector<8x8xf32>
    %140 = arith.truncf %139 : vector<8x8xf32> to vector<8x8xbf16>
    %cst_37 = arith.constant dense<0.000000e+00> : vector<8x4xf32>
    %141 = tpu.matmul %140, %128, %cst_37 {dimension_numbers = #tpu.dot_dimension_numbers<[1], [0], [0], [1], [0, 0, 1, 1], [], []>} : vector<8x8xbf16>, vector<8x4xbf16>, vector<8x4xf32> -> vector<8x4xf32>
    %142 = tpu.concatenate %29, %45, %61, %77, %93, %109, %125, %141 in 1 : vector<8x4xf32>, vector<8x4xf32>, vector<8x4xf32>, vector<8x4xf32>, vector<8x4xf32>, vector<8x4xf32>, vector<8x4xf32>, vector<8x4xf32> -> vector<8x32xf32>
    %c0_38 = arith.constant 0 : index
    %c0_39 = arith.constant 0 : index
    %c0_40 = arith.constant 0 : index
    %143 = vector.load %arg6[%c0_38, %c0_39, %c0_40] : memref<1x8x32xf32, #tpu.memory_space<vmem>>, vector<1x8x32xf32>
    %144 = vector.shape_cast %143 : vector<1x8x32xf32> to vector<8x32xf32>
    %145 = vector.shape_cast %142 : vector<8x32xf32> to vector<1x8x32xf32>
    tpu.vector_store %arg6[%c0_38, %c0_39, %c0_40], %145 {strides = array<i32>} : memref<1x8x32xf32, #tpu.memory_space<vmem>>, vector<1x8x32xf32>,
    return
  }
  func.func @transform_0(%arg0: i32, %arg1: i32) -> (i32, i32, i32) {
    %c0_i32 = arith.constant 0 : i32
    %c0_i32_0 = arith.constant 0 : i32
    return %arg0, %arg1, %c0_i32 : i32, i32, i32
  }
  func.func @transform_1(%arg0: i32, %arg1: i32) -> (i32, i32, i32) {
    %c0_i32 = arith.constant 0 : i32
    %c0_i32_0 = arith.constant 0 : i32
    %c0_i32_1 = arith.constant 0 : i32
    return %arg0, %c0_i32, %c0_i32_0 : i32, i32, i32
  }
  func.func @transform_2(%arg0: i32, %arg1: i32) -> (i32, i32) {
    %c0_i32 = arith.constant 0 : i32
    %c0_i32_0 = arith.constant 0 : i32
    %c0_i32_1 = arith.constant 0 : i32
    return %c0_i32, %c0_i32_0 : i32, i32
  }
  func.func @transform_3(%arg0: i32, %arg1: i32) -> (i32, i32) {
    %c0_i32 = arith.constant 0 : i32
    %c0_i32_0 = arith.constant 0 : i32
    %c0_i32_1 = arith.constant 0 : i32
    return %c0_i32, %c0_i32_0 : i32, i32
  }
  func.func @transform_4(%arg0: i32, %arg1: i32) -> (i32, i32, i32) {
    %c0_i32 = arith.constant 0 : i32
    %c0_i32_0 = arith.constant 0 : i32
    return %arg0, %arg1, %c0_i32 : i32, i32, i32
  }
}

</mosaic_0001>

<bundles_post_ra>
// kernel: tpu_custom_call.1
= control target key start
LH: loop header
LB: loop body
LE: loop exit
PB: predicated region body
PF: predicated region fallthrough
CT: control target
= control target key end

     0   :  { %s1641_s0 = inlined_call_operand.hbm [shape: f32[2,8,32], index: 0, kind: input, shape index: {}]   ;;  %s1642_s1 = inlined_call_operand.hbm [shape: f32[2,8,32], index: 1, kind: input, shape index: {}]   ;;  %s1643_s2 = inlined_call_operand.hbm [shape: bf16[32,96], index: 2, kind: input, shape index: {}]   ;;  %s1644_s3 = inlined_call_operand.vmem [shape: f32[1,96], index: 3, kind: input, shape index: {}]   ;;  %s1645_s4 = inlined_call_operand.hbm [shape: f32[2,8,32], index: 4, kind: output, shape index: {}]  }
   0x1   :  { %1649 = sst [smem:[#allocation17_spill]] %s1643_s2 }
   0x2   :  { %9 = vsyncpa [#allocation3], 0 }
   0x3   :  { %11 = vsyncpa [#allocation3 + $0x1], 0 }
   0x4   :  { %12 = vsyncpa [#allocation6], 0 }
   0x5   :  { %14 = vsyncpa [#allocation6 + $0x1], 0 }
   0x6   :  { %15 = vsyncpa [#allocation4], 0 }
   0x7   :  { %17 = vsyncpa [#allocation4 + $0x1], 0  ;;  %s1377_s15 = smov 0   ;;  %s1379_s16 = smov 0  }
   0x8   :  { %s1381_s17 = smov 0   ;;  %s1383_s18 = smov 0  }
   0x9   :  { %s1385_s19 = smov 0   ;;  %s1387_s20 = smov 0  }
   0xa LB: > { %1650 = sst [smem:[#allocation13_spill]] %s1305_s17  ;;  %s1408_s21 = sadd.s32 4294967295, %s1317_s20   ;;  %s1317_s20 = sphi %s1387_s20, %s23_s20   ;;  %s1313_s19 = sphi %s1385_s19, %s1663_s19   ;;  %s1309_s18 = sphi %s1383_s18, %s1662_s18   ;;  %s1305_s17 = sphi %s1381_s17, %s1661_s17   ;;  %s1301_s16 = sphi %s1379_s16, %s1665_s16   ;;  %s1297_s15 = sphi %s1377_s15, %s1664_s15  }
   0xb   : > { %1651 = sst [smem:[#allocation14_spill]] %s1313_s19  ;;  %p952_p0 = scmp.ge.s32.totalorder %s1317_s20, 1 }
   0xc   : > { %p58_p1 = scmp.eq.s32.totalorder %s1408_s21, 0  ;;  %p164_p2 = scmp.lt.s32.totalorder %s1317_s20, 3 }
   0xd   : > { %s1652_s2 = sld [smem:[#allocation17_spill]]  ;;  %s1319_s26 = smov [#allocation7]  }
   0xe   : > { %p1416_p3 = pnand %p952_p0, %p164_p2  ;;  %s177_s27 = sshll.u32 %s1319_s26, 4  ;;  %s178_s27 = int_to_ptr.vmem [resolvable:$true] %s177_s27 }
   0xf   : > { %p954_p6 = scmp.ge.s32.totalorder %s1317_s20, 2  ;;  %s1320_s28 = smov 64  }
  0x10   : > { %p1004_p4 = pneg %p1416_p3  ;;  %s1321_s29 = smov 4  }
  0x11   : > { %s951_s30 = sadd.s32 4294967294, %s1317_s20   ;;  %s35_s5 = sadd.s32 1, %s1313_s19 }
  0x12   : > { %p1005_p5 = pnand %p1004_p4, %p58_p1  ;;  %s44_s6 = sadd.s32 1, %s1305_s17 }
  0x13   : > { %s175_s24 = sshll.u32 %s1652_s2, 4  ;;  %p37_p7 = scmp.ge.s32.totalorder %s35_s5, 2  ;;  %s176_s24 = int_to_ptr.hbm [resolvable:$true] %s175_s24 }
  0x14   : > { %1007 = dma.hbm_to_vmem [thread:$0]  (!%p1005_p5), %s176_s24, 256, %s178_s27, [#allocation6], %s1320_s28, %s1320_s28, %s1321_s29  }
  0x15   : > { %p51_p8 = scmp.ne.s32.totalorder %s1305_s17, %s1301_s16  ;;  %p52_p9 = scmp.eq.s32.totalorder %s1317_s20, 0 }
  0x16   : > { %p57_p10 = scmp.ne.s32.totalorder %s1301_s16, %s1297_s15  ;;  %s1667_s5 = smov (%p37_p7, %s35_s5), 0 }
  0x17   : > { %1654 = sst [smem:[#allocation15_spill]] %s1667_s5  ;;  %p1435_p11 = por %p52_p9, %p51_p8 }
  0x18   : > { %p1441_p12 = por %p58_p1, %p57_p10  ;;  %s39_s9 = ssub.s32 %s1313_s19, %s1667_s5 }
  0x19   : > { %p151_p13 = scmp.eq.s32.totalorder %s1408_s21, 1  ;;  %p42_p0 = scmp.eq.s32.totalorder %s39_s9, 0 }
  0x1a   : > { %p157_p2 = scmp.eq.s32.totalorder %s951_s30, 1  ;;  %p1020_p5 = scmp.lt.s32.totalorder %s1317_s20, 2 }
  0x1b   : > { %p1448_p4 = por %p151_p13, %p51_p8  ;;  %s194_s13 = sand.u32 1, %s1305_s17  }
  0x1c   : > { %s1454_s11 = scalar_select %p42_p0, %s1305_s17, %s44_s6  }
  0x1d   : > { %p1456_p7 = por %p157_p2, %p57_p10  ;;  %s955_s14 = sshll.u32 %s194_s13, 3 }
  0x1e   : > { %1658 = sst [smem:[#allocation16_spill]] %s1454_s11  ;;  %s956_s22 = sshll.u32 %s1313_s19, 3 }
  0x1f   : > { %s203_s26 = scalar_lea.hbm %s1641_s0, %s956_s22  ;;  %s198_s27 = scalar_lea.vmem [#allocation2], %s955_s14 }
  0x20   : > { %s207_s28 = sshll.u32 %s198_s27, 4  ;;  %s205_s29 = sshll.u32 %s203_s26, 4  ;;  %s208_s28 = int_to_ptr.vmem [resolvable:$true] %s207_s28  ;;  %s206_s29 = int_to_ptr.hbm [resolvable:$true] %s205_s29 }
  0x21   : > { %p1009_p8 = pnand %p1020_p5, %p1435_p11  ;;  %s222_s9 = scalar_lea.hbm %s1642_s1, %s956_s22 }
  0x22   : > { %s214_s2 = sand.u32 1, %s1317_s20   ;;  %s195_s5 = scalar_lea.sflag [#allocation3], %s194_s13 }
  0x23   : > { %1011 = dma.hbm_to_vmem [thread:$0]  (!%p1009_p8), %s206_s29, 128, %s208_s28, %s195_s5  }
  0x24   : > { %s224_s11 = sshll.u32 %s222_s9, 4  ;;  %s218_s19 = scalar_lea.vmem [#allocation5], %s955_s14  ;;  %s225_s11 = int_to_ptr.hbm [resolvable:$true] %s224_s11 }
  0x25   : > { %s226_s17 = sshll.u32 %s218_s19, 4  ;;  %s215_s23 = scalar_lea.sflag [#allocation6], %s214_s2  ;;  %s227_s17 = int_to_ptr.vmem [resolvable:$true] %s226_s17 }
  0x26   : > { %1014 = dma.hbm_to_vmem [thread:$0]  (!%p1009_p8), %s225_s11, 128, %s227_s17, %s215_s23  }
  0x27   : > { %235 = sbr.rel (%p1416_p3) target bundleno = 1042 (0x412), region = 36  ;;  %s1474_s7 = sand.u32 (!%p1416_p3), 1, %s1301_s16  }
  0x28   : > { %s238_s24 = scalar_lea.sflag (!%p1416_p3), [#allocation3], %s1474_s7 }
  0x2c   : > { %1280 = dma.done.wait (%p1441_p12), %s238_s24, 128  }
  0x2d   : > { %1282 = vsyncadd (%p1441_p12), %s238_s24, 4294967168  ;;  %s247_s2 = sand.u32 1, %s1408_s21   ;;  %s960_s17 = sshll.u32 %s1474_s7, 3 }
  0x2e   : > { %s248_s19 = scalar_lea.sflag [#allocation6], %s247_s2  ;;  %s251_s25 = scalar_lea.vmem [#allocation5], %s960_s17 }
  0x2f   : > { %1284 = dma.done.wait (%p1441_p12), %s248_s19, 128  }
  0x30   : > { %1286 = vsyncadd (%p1441_p12), %s248_s19, 4294967168 }
  0x31   : > { %1288 = dma.done.wait (%p58_p1), [#allocation6], 256  }
  0x32   : > { %1290 = vsyncadd (%p58_p1), [#allocation6], 4294967040  ;;  %v993_v0 = vld [vmem:[#allocation7 + $0x8] sm:$0xff]  ;;  %v992_v1 = vld [vmem:[#allocation7] sm:$0xff]  ;;  %vm310_vm0 = vcmask 261120   ;;  %s1322_s21 = smov 116  }
  0x33   : > { %320 = vmatpush.bf16.msra.mxu0 %v993_v0  ;;  %v288_v2 = vld [vmem:[%s251_s25] sm:$0xff]  ;;  %v1104_v4 = vld [vmem:[%s1644_s3] ss:$0 sm:$0xff]  ;;  %s1323_s8 = smov 124   ;;  %s1324_s13 = smov 96   ;;  %vm333_vm1 = vcmask 31744  }
  0x34   : > { %v289_v3 = vpack.c.bf16 %v288_v2, %v288_v2  ;;  %s1325_s14 = smov 88   ;;  %s1326_s22 = smov 84   ;;  %vm353_vm2 = vcmask 64512   ;;  %vm371_vm3 = vcmask 1043456   ;;  %vm810_vm4 = vcmask 97280  }
  0x35   : > { %s1327_s26 = smov 92   ;;  %s1328_s27 = smov 108   ;;  %vm812_vm5 = vcmask 130048   ;;  %vm814_vm6 = vcmask 162816   ;;  %vm816_vm7 = vcmask 195584   ;;  %vm818_vm8 = vcmask 228352  }
  0x36   : > { %s1329_s28 = smov 120   ;;  %s1330_s29 = smov 76  }
  0x37   : > { %321 = vmatpush.bf16.msra.mxu0 %v992_v1  ;;  %s1331_s30 = smov 112   ;;  %s1332_s6 = smov 68  }
  0x38   : > { %s1333_s9 = smov 80   ;;  %s1334_s23 = smov 104  }
  0x39   : > { %s1335_s24 = smov 72   ;;  %s1336_s2 = smov 100  }
  0x3a   : > { %971 = vmatmul.msk.bf16.vlgmr.msra.gmra.mxu0 %vm310_vm0, %v289_v3  ;;  %s1337_s19 = smov 60   ;;  %s1338_s25 = smov 64  }
  0x3b   : > { %s1339_s5 = smov 52   ;;  %s1340_s11 = smov 44  }
  0xb7   : > { %v323_v5 = vpop.f32.mrf.mxu0 }
  0xb8   : > { %v324_v6 = vadd.f32 %v1104_v4, %v323_v5 }
  0xba   : > { %v327_v7 = vpack.c.bf16 %v324_v6, %v324_v6 }
  0xbc   : > { %v329_v8 = vunpack.c.l.b16 %v327_v7 }
  0xbe   : > { %v1497_v9 = vpack.c.b16 %v329_v8, %v329_v8 }
  0xbf   : > { %v325_v10 = vpop.f32.mrf.mxu0 }
  0xc0   : > { %500 = vrot.lane.b32.xlu2 %v1497_v9, %s1322_s21  ;;  %388 = vrot.lane.b32.xlu1 %v1497_v9, %s1323_s8  ;;  %s1341_s21 = smov 48   ;;  %s1342_s8 = smov 56  }
  0xc1   : > { %331 = vrot.lane.b32.xlu0 %v1497_v9, %s1324_s13  ;;  %s1343_s13 = smov 36  }
  0xc8   : > { %446 = vrot.lane.b32.xlu2 %v1497_v9, %s1325_s14  ;;  %502 = vrot.lane.b32.xlu1 %v1497_v9, %s1326_s22  ;;  %s1344_s14 = smov 40   ;;  %s1345_s22 = smov 8  }
  0xc9   : > { %390 = vrot.lane.b32.xlu0 %v1497_v9, %s1327_s26  ;;  %s1346_s26 = smov 4  }
  0xd0   : > { %612 = vrot.lane.b32.xlu2 %v1497_v9, %s1328_s27  ;;  %444 = vrot.lane.b32.xlu1 %v1497_v9, %s1329_s28  ;;  %s1347_s27 = smov 16   ;;  %s1348_s28 = smov 12  }
  0xd1   : > { %614 = vrot.lane.b32.xlu0 %v1497_v9, %s1330_s29  ;;  %s1349_s29 = smov 24  }
  0xd8   : > { %556 = vrot.lane.b32.xlu2 %v1497_v9, %s1331_s30  ;;  %726 = vrot.lane.b32.xlu1 %v1497_v9, %s1332_s6  ;;  %s1350_s30 = smov 20   ;;  %s1351_s6 = smov 28  }
  0xd9   : > { %558 = vrot.lane.b32.xlu0 %v1497_v9, %s1333_s9  ;;  %s989_s9 = sshll.u32 %s1309_s18, 3  ;;  %s822_s18 = scalar_lea.sflag [#allocation4], %s1474_s7 }
  0xe0   : > { %668 = vrot.lane.b32.xlu2 %v1497_v9, %s1334_s23  ;;  %670 = vrot.lane.b32.xlu1 %v1497_v9, %s1335_s24 }
  0xe1   : > { %724 = vrot.lane.b32.xlu0 %v1497_v9, %s1336_s2  ;;  %s833_s2 = scalar_lea.hbm %s1645_s4, %s989_s9 }
  0xe8   : > { %423 = vrot.lane.b32.xlu2 %v1497_v9, %s1337_s19  ;;  %s286_s19 = scalar_lea.vmem [#allocation8], %s960_s17 }
 0x11a   : > { %v501_v11 = vpop.permute.xlu2 %500 }
 0x122   : > { %v447_v12 = vpop.permute.xlu2 %446 }
 0x123   : > { %v452_v13 = vsel %vm333_vm1, %v447_v12, 0 }
 0x124   : > { %461 = vmatpush.bf16.xpose.msrb.mxu0 %v452_v13 }
 0x12a   : > { %v613_v24 = vpop.permute.xlu2 %612 }
 0x132   : > { %v389_v14 = vpop.permute.xlu1 %388  ;;  %v557_v29 = vpop.permute.xlu2 %556 }
 0x133   : > { %v332_v15 = vpop.permute.xlu0 %331 }
 0x134   : > { %v338_v16 = vsel %vm333_vm1, %v332_v15, 0 }
 0x135   : > { %347 = vmatpush.bf16.xpose.msra.mxu1 %v338_v16 }
 0x13a   : > { %v503_v17 = vpop.permute.xlu1 %502  ;;  %v669_v32 = vpop.permute.xlu2 %668 }
 0x13b   : > { %v391_v18 = vpop.permute.xlu0 %390  ;;  %v508_v19 = vsel %vm333_vm1, %v503_v17, 0 }
 0x13c   : > { %972 = vmatmul.msk.bf16.vlgmr.msra.gmra.mxu1 %vm333_vm1, %v327_v7  ;;  %v396_v20 = vsel %vm333_vm1, %v391_v18, 0 }
 0x13d   : > { %405 = vmatpush.bf16.xpose.msra.mxu3 %v396_v20 }
 0x142   : > { %v445_v21 = vpop.permute.xlu1 %444  ;;  %v424_v58 = vpop.permute.xlu2 %423 }
 0x143   : > { %v615_v22 = vpop.permute.xlu0 %614  ;;  %976 = vmatmul.msk.bf16.vlgmr.msrb.gmra.mxu0 %vm333_vm1, %v445_v21 }
 0x144   : > { %v620_v23 = vsel %vm333_vm1, %v615_v22, 0  ;;  %974 = vmatmul.msk.bf16.vlgmr.msra.gmra.mxu3 %vm333_vm1, %v389_v14 }
 0x145   : > { %517 = vmatpush.bf16.xpose.msrb.mxu3 %v508_v19 }
 0x14a   : > { %v727_v25 = vpop.permute.xlu1 %726 }
 0x14b   : > { %v559_v26 = vpop.permute.xlu0 %558  ;;  %v732_v31 = vsel %vm333_vm1, %v727_v25, 0 }
 0x14c   : > { %v564_v27 = vsel %vm333_vm1, %v559_v26, 0 }
 0x14d   : > { %629 = vmatpush.bf16.xpose.msra.mxu3 %v620_v23  ;;  %573 = vmatpush.bf16.xpose.msra.mxu0 %v564_v27 }
 0x152   : > { %v671_v28 = vpop.permute.xlu1 %670 }
 0x153   : > { %v676_v30 = vsel %vm333_vm1, %v671_v28, 0  ;;  %v725_v33 = vpop.permute.xlu0 %724 }
 0x154   : > { %978 = vmatmul.msk.bf16.vlgmr.msrb.gmra.mxu3 %vm333_vm1, %v501_v11  ;;  %980 = vmatmul.msk.bf16.vlgmr.msra.gmra.mxu0 %vm333_vm1, %v557_v29  ;;  %v429_v11 = vsel %vm371_vm3, %v424_v58, 0 }
 0x155   : > { %741 = vmatpush.bf16.xpose.msrb.mxu3 %v732_v31  ;;  %685 = vmatpush.bf16.xpose.msrb.mxu0 %v676_v30 }
 0x164   : > { %982 = vmatmul.msk.bf16.vlgmr.msra.gmra.mxu3 %vm333_vm1, %v613_v24  ;;  %984 = vmatmul.msk.bf16.vlgmr.msrb.gmra.mxu0 %vm333_vm1, %v669_v32 }
 0x174   : > { %986 = vmatmul.msk.bf16.vlgmr.msrb.gmra.mxu3 %vm333_vm1, %v725_v33 }
 0x1b9   : > { %v349_v34 = vpop.f32.mrf.mxu1 }
 0x1ba   : > { %v354_v35 = vsel %vm353_vm2, %v349_v34, -inf }
 0x1bb   : > { %355 = vmax.xlane.f32.xlu0 %v354_v35 }
 0x1c0   : > { %v463_v36 = vpop.f32.mrf.mxu0 }
 0x1c1   : > { %v351_v37 = vpop.f32.mrf.mxu1  ;;  %v467_v38 = vsel %vm353_vm2, %v463_v36, -inf }
 0x1c2   : > { %468 = vmax.xlane.f32.xlu2 %v467_v38 }
 0x1c7   : > { %v407_v39 = vpop.f32.mrf.mxu3 }
 0x1c8   : > { %v465_v40 = vpop.f32.mrf.mxu0  ;;  %v411_v41 = vsel %vm353_vm2, %v407_v39, -inf }
 0x1c9   : > { %412 = vmax.xlane.f32.xlu1 %v411_v41 }
 0x1cf   : > { %366 = vrot.lane.b32.xlu0 %v1497_v9, %s1338_s25  ;;  %v409_v42 = vpop.f32.mrf.mxu3  ;;  %s835_s25 = sshll.u32 %s286_s19, 4  ;;  %s836_s25 = int_to_ptr.vmem [resolvable:$true] %s835_s25 }
 0x1d1   : > { %v575_v43 = vpop.f32.mrf.mxu0 }
 0x1d2   : > { %v579_v44 = vsel %vm353_vm2, %v575_v43, -inf }
 0x1d3   : > { %580 = vmax.xlane.f32.xlu2 %v579_v44 }
 0x1d7   : > { %v519_v45 = vpop.f32.mrf.mxu3 }
 0x1d8   : > { %v523_v47 = vsel %vm353_vm2, %v519_v45, -inf }
 0x1d9   : > { %v577_v46 = vpop.f32.mrf.mxu0 }
 0x1db   : > { %524 = vmax.xlane.f32.xlu2 %v523_v47 }
 0x1df   : > { %v521_v48 = vpop.f32.mrf.mxu3 }
 0x1e1   : > { %v687_v49 = vpop.f32.mrf.mxu0 }
 0x1e2   : > { %v691_v50 = vsel %vm353_vm2, %v687_v49, -inf }
 0x1e3   : > { %692 = vmax.xlane.f32.xlu1 %v691_v50 }
 0x1e7   : > { %v631_v51 = vpop.f32.mrf.mxu3 }
 0x1e8   : > { %v635_v55 = vsel %vm353_vm2, %v631_v51, -inf }
 0x1e9   : > { %v689_v52 = vpop.f32.mrf.mxu0 }
 0x1ef   : > { %v633_v53 = vpop.f32.mrf.mxu3 }
 0x1f7   : > { %v1538_v54 = vpop.f32.mrf.mxu3 }
 0x1f8   : > { %v747_v56 = vsel %vm353_vm2, %v1538_v54, -inf }
 0x1f9   : > { %636 = vmax.xlane.f32.xlu0 %v635_v55  ;;  %748 = vmax.xlane.f32.xlu1 %v747_v56 }
 0x1ff   : > { %v745_v57 = vpop.f32.mrf.mxu3 }
 0x22e   : > { %v356_v59 = vpop.xlane.xlu0 %355 }
 0x22f   : > { %v357_v60 = vsub.f32 %v349_v34, %v356_v59 }
 0x231   : > { %v358_v61 = vmul.f32 1.442695, %v357_v60 }
 0x233   : > { %1105 = vpow2.f32 %v358_v61 }
 0x235   : > { %v469_v62 = vpop.xlane.xlu2 %468 }
 0x236   : > { %v470_v63 = vsub.f32 %v463_v36, %v469_v62 }
 0x238   : > { %v471_v0 = vmul.f32 1.442695, %v470_v63 }
 0x239   : > { %v1543_v1 = vpop.eup %1105 }
 0x23a   : > { %1107 = vpow2.f32 %v471_v0  ;;  %v360_v2 = vsel %vm353_vm2, %v1543_v1, 0.0 }
 0x23b   : > { %361 = vadd.xlane.f32.xlu1 %v360_v2 }
 0x23c   : > { %v413_v3 = vpop.xlane.xlu1 %412 }
 0x23d   : > { %v414_v4 = vsub.f32 %v407_v39, %v413_v3 }
 0x23f   : > { %v415_v5 = vmul.f32 1.442695, %v414_v4 }
 0x240   : > { %v1547_v6 = vpop.eup %1107 }
 0x241   : > { %1109 = vpow2.f32 %v415_v5  ;;  %v367_v7 = vpop.permute.xlu0 %366  ;;  %v473_v8 = vsel %vm353_vm2, %v1547_v6, 0.0 }
 0x242   : > { %474 = vadd.xlane.f32.xlu0 %v473_v8  ;;  %v373_v10 = vsel %vm371_vm3, %v367_v7, 0 }
 0x243   : > { %382 = vmatpush.bf16.msra.mxu2 %v373_v10 }
 0x246   : > { %v581_v14 = vpop.xlane.xlu2 %580 }
 0x247   : > { %438 = vmatpush.bf16.msrb.mxu2 %v429_v11  ;;  %v1553_v12 = vpop.eup %1109  ;;  %v582_v15 = vsub.f32 %v575_v43, %v581_v14 }
 0x248   : > { %v417_v13 = vsel %vm353_vm2, %v1553_v12, 0.0 }
 0x249   : > { %418 = vadd.xlane.f32.xlu2 %v417_v13  ;;  %v583_v16 = vmul.f32 1.442695, %v582_v15 }
 0x24b   : > { %1111 = vpow2.f32 %v583_v16 }
 0x24e   : > { %v525_v17 = vpop.xlane.xlu2 %524 }
 0x24f   : > { %v526_v19 = vsub.f32 %v519_v45, %v525_v17 }
 0x251   : > { %v527_v22 = vmul.f32 1.442695, %v526_v19  ;;  %v1112_v24 = vpop.eup %1111 }
 0x252   : > { %v585_v28 = vsel %vm353_vm2, %v1112_v24, 0.0 }
 0x253   : > { %1113 = vpow2.f32 %v527_v22 }
 0x254   : > { %535 = vrot.lane.b32.xlu1 %v1497_v9, %s1339_s5  ;;  %s837_s5 = sshll.u32 %s833_s2, 4  ;;  %s838_s5 = int_to_ptr.hbm [resolvable:$true] %s837_s5 }
 0x256   : > { %647 = vrot.lane.b32.xlu0 %v1497_v9, %s1340_s11  ;;  %v693_v18 = vpop.xlane.xlu1 %692  ;;  %s1241_s11 = sshra.s32 %s838_s5, 4  ;;  %s1242_s11 = int_to_ptr.hbm [resolvable:$true] %s1241_s11 }
 0x257   : > { %v694_v21 = vsub.f32 %v687_v49, %v693_v18  ;;  %p1248_p10 = scmp.lt.s32.totalorder %s1242_s11, %s1645_s4 }
 0x259   : > { %v695_v25 = vmul.f32 1.442695, %v694_v21  ;;  %v1114_v30 = vpop.eup %1113 }
 0x25a   : > { %v529_v33 = vsel %vm353_vm2, %v1114_v30, 0.0 }
 0x25b   : > { %1115 = vpow2.f32 %v695_v25 }
 0x25e   : > { %591 = vrot.lane.b32.xlu0 %v1497_v9, %s1341_s21  ;;  %s1243_s21 = scalar_lea.hbm %s1242_s11, 8 }
 0x25f   : > { %p1244_p1 = scmp.ne.s32.totalorder %s1242_s11, %s1243_s21 }
 0x261   : > { %479 = vrot.lane.b32.xlu2 %v1497_v9, %s1342_s8  ;;  %v1563_v31 = vpop.eup %1115  ;;  %p1245_p3 = pnand %p1244_p1, %p1448_p4 }
 0x262   : > { %v697_v35 = vsel %vm353_vm2, %v1563_v31, 0.0 }
 0x263   : > { %p1246_p9 = pneg %p1245_p3 }
 0x26c   : > { %v637_v20 = vpop.xlane.xlu0 %636  ;;  %v749_v27 = vpop.xlane.xlu1 %748 }
 0x26d   : > { %v638_v23 = vsub.f32 %v631_v51, %v637_v20  ;;  %v750_v29 = vsub.f32 %v1538_v54, %v749_v27 }
 0x26f   : > { %v639_v26 = vmul.f32 1.442695, %v638_v23  ;;  %v751_v32 = vmul.f32 1.442695, %v750_v29 }
 0x271   : > { %1117 = vpow2.f32 %v639_v26 }
 0x272   : > { %1119 = vpow2.f32 %v751_v32 }
 0x277   : > { %v1566_v34 = vpop.eup %1117 }
 0x278   : > { %v641_v36 = vsel %vm353_vm2, %v1566_v34, 0.0  ;;  %v1572_v37 = vpop.eup %1119 }
 0x279   : > { %v753_v38 = vsel %vm353_vm2, %v1572_v37, 0.0 }
 0x27e   : > { %586 = vadd.xlane.f32.xlu1 %v585_v28 }
 0x286   : > { %530 = vadd.xlane.f32.xlu1 %v529_v33 }
 0x288   : > { %698 = vadd.xlane.f32.xlu0 %v697_v35 }
 0x28a   : > { %642 = vadd.xlane.f32.xlu2 %v641_v36 }
 0x292   : > { %754 = vadd.xlane.f32.xlu2 %v753_v38 }
 0x29f   : > { %759 = vrot.lane.b32.xlu1 %v1497_v9, %s1343_s13  ;;  %s1247_s13 = scalar_lea.hbm %s1645_s4, 16 }
 0x2a0   : > { %p1249_p11 = scmp.lt.s32.totalorder %s1247_s13, %s1243_s21 }
 0x2a2   : > { %p1250_p12 = por %p1249_p11, %p1248_p10 }
 0x2a4   : > { %p1251_p13 = pnand %p1250_p12, %p1246_p9 }
 0x2aa   : > { %703 = vrot.lane.b32.xlu2 %v1497_v9, %s1344_s14 }
 0x2ae   : > { %v362_v39 = vpop.xlane.xlu1 %361 }
 0x2af   : > { %1121 = vrcp.f32 %v362_v39 }
 0x2b5   : > { %v1122_v40 = vpop.eup %1121  ;;  %v475_v42 = vpop.xlane.xlu0 %474 }
 0x2b6   : > { %v364_v41 = vmul.f32 %v1122_v40, %v1543_v1  ;;  %1123 = vrcp.f32 %v475_v42 }
 0x2b8   : > { %v365_v43 = vpack.c.bf16 %v364_v41, %v364_v41 }
 0x2ba   : > { %973 = vmatmul.msk.bf16.vlgmr.msra.gmra.mxu2 %vm353_vm2, %v365_v43 }
 0x2bc   : > { %v419_v44 = vpop.xlane.xlu2 %418  ;;  %v1124_v45 = vpop.eup %1123 }
 0x2bd   : > { %1125 = vrcp.f32 %v419_v44  ;;  %v477_v47 = vmul.f32 %v1124_v45, %v1547_v6 }
 0x2bf   : > { %v478_v52 = vpack.c.bf16 %v477_v47, %v477_v47 }
 0x2c3   : > { %v1126_v46 = vpop.eup %1125 }
 0x2c4   : > { %v421_v48 = vmul.f32 %v1126_v46, %v1553_v12  ;;  %v480_v49 = vpop.permute.xlu2 %479 }
 0x2c5   : > { %v485_v9 = vsel %vm371_vm3, %v480_v49, 0 }
 0x2c6   : > { %494 = vmatpush.bf16.msrb.mxu1 %v485_v9  ;;  %v536_v50 = vpop.permute.xlu1 %535  ;;  %v422_v54 = vpack.c.bf16 %v421_v48, %v421_v48 }
 0x2c7   : > { %v541_v51 = vsel %vm371_vm3, %v536_v50, 0 }
 0x2c8   : > { %550 = vmatpush.bf16.msra.mxu2 %v541_v51  ;;  %v648_v53 = vpop.permute.xlu0 %647 }
 0x2c9   : > { %977 = vmatmul.msk.bf16.vlgmr.msrb.gmra.mxu1 %vm353_vm2, %v478_v52  ;;  %v653_v55 = vsel %vm371_vm3, %v648_v53, 0 }
 0x2ca   : > { %975 = vmatmul.msk.bf16.vlgmr.msrb.gmra.mxu2 %vm353_vm2, %v422_v54 }
 0x2cc   : > { %662 = vmatpush.bf16.msrb.mxu2 %v653_v55 }
 0x2d0   : > { %v592_v56 = vpop.permute.xlu0 %591 }
 0x2d1   : > { %v597_v57 = vsel %vm371_vm3, %v592_v56, 0 }
 0x2d2   : > { %606 = vmatpush.bf16.msra.mxu1 %v597_v57 }
 0x2f1   : > { %v587_v58 = vpop.xlane.xlu1 %586 }
 0x2f2   : > { %1127 = vrcp.f32 %v587_v58 }
 0x2f8   : > { %v1128_v59 = vpop.eup %1127 }
 0x2f9   : > { %v589_v60 = vmul.f32 %v1128_v59, %v1112_v24  ;;  %v531_v61 = vpop.xlane.xlu1 %530 }
 0x2fa   : > { %1129 = vrcp.f32 %v531_v61 }
 0x2fb   : > { %v590_v62 = vpack.c.bf16 %v589_v60, %v589_v60  ;;  %v699_v1 = vpop.xlane.xlu0 %698 }
 0x2fc   : > { %1131 = vrcp.f32 %v699_v1 }
 0x2fd   : > { %v643_v63 = vpop.xlane.xlu2 %642  ;;  %981 = vmatmul.msk.bf16.vlgmr.msra.gmra.mxu1 %vm353_vm2, %v590_v62 }
 0x2fe   : > { %1133 = vrcp.f32 %v643_v63 }
 0x300   : > { %v1130_v0 = vpop.eup %1129 }
 0x301   : > { %v533_v2 = vmul.f32 %v1130_v0, %v1114_v30 }
 0x302   : > { %v1132_v5 = vpop.eup %1131 }
 0x303   : > { %v534_v3 = vpack.c.bf16 %v533_v2, %v533_v2  ;;  %v701_v7 = vmul.f32 %v1132_v5, %v1563_v31 }
 0x304   : > { %v1134_v6 = vpop.eup %1133 }
 0x305   : > { %979 = vmatmul.msk.bf16.vlgmr.msra.gmra.mxu2 %vm353_vm2, %v534_v3  ;;  %v755_v4 = vpop.xlane.xlu2 %754  ;;  %v645_v11 = vmul.f32 %v1134_v6, %v1566_v34  ;;  %v702_v12 = vpack.c.bf16 %v701_v7, %v701_v7 }
 0x306   : > { %1135 = vrcp.f32 %v755_v4 }
 0x307   : > { %v646_v15 = vpack.c.bf16 %v645_v11, %v645_v11 }
 0x30c   : > { %v1136_v16 = vpop.eup %1135 }
 0x30d   : > { %v704_v8 = vpop.permute.xlu2 %703  ;;  %v757_v17 = vmul.f32 %v1136_v16, %v1572_v37 }
 0x30e   : > { %v709_v10 = vsel %vm371_vm3, %v704_v8, 0 }
 0x30f   : > { %718 = vmatpush.bf16.msrb.mxu1 %v709_v10  ;;  %v758_v18 = vpack.c.bf16 %v757_v17, %v757_v17 }
 0x311   : > { %v760_v13 = vpop.permute.xlu1 %759 }
 0x312   : > { %v765_v14 = vsel %vm371_vm3, %v760_v13, 0  ;;  %985 = vmatmul.msk.bf16.vlgmr.msrb.gmra.mxu1 %vm353_vm2, %v702_v12 }
 0x313   : > { %774 = vmatpush.bf16.msra.mxu2 %v765_v14 }
 0x315   : > { %983 = vmatmul.msk.bf16.vlgmr.msrb.gmra.mxu2 %vm353_vm2, %v646_v15 }
 0x325   : > { %987 = vmatmul.msk.bf16.vlgmr.msra.gmra.mxu2 %vm353_vm2, %v758_v18 }
 0x33d   : > { %v384_v19 = vpop.f32.mrf.mxu2 }
 0x345   : > { %v386_v20 = vpop.f32.mrf.mxu2 }
 0x346   : > { %v496_v21 = vpop.f32.mrf.mxu1 }
 0x347   : > { %785 = vrot.lane.b32.xlu2 %v496_v21, %s1345_s22 }
 0x34d   : > { %v440_v22 = vpop.f32.mrf.mxu2 }
 0x34e   : > { %781 = vrot.lane.b32.xlu1 %v440_v22, %s1346_s26  ;;  %v498_v23 = vpop.f32.mrf.mxu1 }
 0x355   : > { %v442_v24 = vpop.f32.mrf.mxu2 }
 0x37a   : > { %v608_v25 = vpop.f32.mrf.mxu1 }
 0x37b   : > { %793 = vrot.lane.b32.xlu2 %v608_v25, %s1347_s27 }
 0x382   : > { %v610_v26 = vpop.f32.mrf.mxu1 }
 0x388   : > { %v552_v27 = vpop.f32.mrf.mxu2 }
 0x389   : > { %789 = vrot.lane.b32.xlu1 %v552_v27, %s1348_s28 }
 0x38f   : > { %v720_v28 = vpop.f32.mrf.mxu1 }
 0x390   : > { %v554_v29 = vpop.f32.mrf.mxu2 }
 0x391   : > { %801 = vrot.lane.b32.xlu1 %v720_v28, %s1349_s29 }
 0x397   : > { %v722_v30 = vpop.f32.mrf.mxu1 }
 0x398   : > { %v664_v31 = vpop.f32.mrf.mxu2 }
 0x399   : > { %797 = vrot.lane.b32.xlu0 %v664_v31, %s1350_s30 }
 0x3a0   : > { %v666_v32 = vpop.f32.mrf.mxu2 }
 0x3a1   : > { %v786_v36 = vpop.permute.xlu2 %785 }
 0x3a8   : > { %v776_v33 = vpop.f32.mrf.mxu2 }
 0x3a9   : > { %805 = vrot.lane.b32.xlu2 %v776_v33, %s1351_s6 }
 0x3b0   : > { %v778_v34 = vpop.f32.mrf.mxu2 }
 0x3c0   : > { %v782_v35 = vpop.permute.xlu1 %781 }
 0x3c1   : > { %v808_v38 = vsel %vm333_vm1, %v384_v19, %v782_v35 }
 0x3c2   : > { %v809_v40 = vsel %vm353_vm2, %v808_v38, %v786_v36 }
 0x3d5   : > { %v794_v39 = vpop.permute.xlu2 %793 }
 0x3fb   : > { %v790_v37 = vpop.permute.xlu1 %789 }
 0x3fc   : > { %v811_v41 = vsel %vm810_vm4, %v809_v40, %v790_v37 }
 0x3fd   : > { %v813_v42 = vsel %vm812_vm5, %v811_v41, %v794_v39 }
 0x403   : > { %v802_v44 = vpop.permute.xlu1 %801  ;;  %v806_v46 = vpop.permute.xlu2 %805 }
 0x40b   : > { %v798_v43 = vpop.permute.xlu0 %797 }
 0x40c   : > { %v815_v45 = vsel %vm814_vm6, %v813_v42, %v798_v43 }
 0x40d   : > { %v817_v47 = vsel %vm816_vm7, %v815_v45, %v802_v44 }
 0x40e   : > { %v819_v48 = vsel %vm818_vm8, %v817_v47, %v806_v46 }
 0x40f   : > { %820 = vst.msk [vmem:[%s286_s19] sm:$0xff] %vm310_vm0, %v819_v48 }
 0x410   : > { %1254 = shalt.err (!%p1251_p13)
}
 0x411   : > { %1002 = dma.vmem_to_hbm [thread:$0]  (%p1448_p4), %s836_s25, 128, %s838_s5, %s822_s18  }
 0x412 PF: > { %s849_s7 = sand.u32 1, %s1297_s15   ;;  %p1016_p0 = pnand %p954_p6, %p1456_p7 }
 0x413   : > { %s850_s26 = scalar_lea.sflag [#allocation4], %s849_s7 }
 0x414   : > { %p1017_p2 = pneg %p1016_p0 }
 0x416   : > { %1292 = dma.done.wait (%p1017_p2), %s850_s26, 128  }
 0x417   : > { %1294 = vsyncadd (%p1017_p2), %s850_s26, 4294967168  ;;  %s23_s20 = sadd.s32 1, %s1317_s20   ;;  %s1660_s27 = sld [smem:[#allocation13_spill]] }
 0x418   : > { %p20_p5 = scmp.ge.s32.totalorder %s23_s20, 4   ;;  %s1661_s17 = sld [smem:[#allocation16_spill]] }
 0x419   : > { %s1662_s18 = sld [smem:[#allocation14_spill]]  ;;  %s1664_s15 = smov %s1301_s16 }
 0x41a   : > { %s1663_s19 = sld [smem:[#allocation15_spill]]  ;;  %22 = sbr.rel (!%p20_p5) target bundleno = 10 (0xa), region = 98 }
 0x41d   : > { %s1665_s16 = smov %s1660_s27 }
 0x41f   :  { %856 = vsyncpa [#allocation3], 1 }
 0x420   :  { %858 = vsyncpa [#allocation3 + $0x1], 1 }
 0x421   :  { %859 = vsyncpa [#allocation6], 1 }
 0x422   :  { %861 = vsyncpa [#allocation6 + $0x1], 1 }
 0x423   :  { %862 = vsyncpa [#allocation4], 1 }
 0x424   :  { %864 = vsyncpa [#allocation4 + $0x1], 1 }

</bundles_post_ra>
